<compile_context>
chip_gen: v5e
topology: v5e:2x2
jax: 0.10.0
libtpu: 0.0.40
codegen_flags: <defaults>
</compile_context>

<pallas_src>
import functools

import jax
import jax.numpy as jnp
from jax.experimental import pallas as pl
from jax.experimental.pallas import tpu as pltpu


# ---------------------------------------------------------------------------
# Pallas kernel: weighted temporal sum with Tt-folded reduction.
#   x_ref: (1, Tt, 1, Cg, TS)     w_ref: (1, 1, Tt, 1, TSw)  TSw in {1, TS}
#   o_ref: (1, 1, Cg, TS)         acc_ref: (Cg, TS) f32 scratch
# Grid = (B, G, S_tiles, T_tiles); T_tiles innermost reduction axis.
# ---------------------------------------------------------------------------
def _wsum_kernel(x_ref, w_ref, o_ref, acc_ref, *, tt):
    tc = pl.program_id(3)

    partial = x_ref[0, 0, 0].astype(jnp.float32) * w_ref[0, 0, 0].astype(jnp.float32)
    for j in range(1, tt):
        partial = partial + (
            x_ref[0, j, 0].astype(jnp.float32) * w_ref[0, 0, j].astype(jnp.float32))

    @pl.when(tc == 0)
    def _init():
        acc_ref[...] = partial

    @pl.when(tc != 0)
    def _accum():
        acc_ref[...] = acc_ref[...] + partial

    @pl.when(tc == pl.num_programs(3) - 1)
    def _finalize():
        o_ref[0, 0] = acc_ref[...].astype(o_ref.dtype)


def _weighted_temporal_sum(xg, wg):
    """xg: (B, T, G, Cg, S); wg: (G, B, T, 1, Sw), Sw in {1, S}.

    Returns (B, G, Cg, S) in xg.dtype (f32 accumulation inside the kernel).
    """
    B, T, G, Cg, S = xg.shape
    Gw, Bw, Tw, _, Sw = wg.shape
    assert (Gw, Bw, Tw) == (G, B, T) and Sw in (1, S), (xg.shape, wg.shape)

    # --- fold a small T chunk per grid step (largest divisor of T, <= 8) -----
    tt = 1
    for d in range(min(T, 8), 0, -1):
        if T % d == 0:
            tt = d
            break

    itemsize = xg.dtype.itemsize
    per_s = tt * Cg * itemsize            # x bytes per unit of S per grid step
    full_bytes = per_s * S
    max_full = 6 << 20                    # allow up to ~6 MiB x-tile at full S
    target = 2 << 20                      # ~2 MiB x-tile target when tiling S

    pad_s = 0
    if full_bytes <= max_full:
        ts = S
        # v7x megacore: make sure the parallel axes provide >= 2 blocks.
        if B * G == 1 and S >= 256 and S % 256 == 0:
            ts = S // 2
    else:
        ts_cap = max(128, (target // per_s) // 128 * 128)
        ts = 0
        t_try = min(ts_cap, (S // 128) * 128)
        while t_try >= 128:               # prefer a multiple-of-128 divisor of S
            if S % t_try == 0:
                ts = t_try
                break
            t_try -= 128
        if ts == 0:                       # rare fallback: pad S (extra copy)
            ts = ts_cap
            pad_s = ((S + ts - 1) // ts) * ts - S

    Sp = S + pad_s
    if pad_s:
        xg = jnp.pad(xg, ((0, 0), (0, 0), (0, 0), (0, 0), (0, pad_s)))
        if Sw == S:
            wg = jnp.pad(wg, ((0, 0), (0, 0), (0, 0), (0, 0), (0, pad_s)))

    tsw = 1 if Sw == 1 else ts
    if Sw == 1:
        w_index = lambda b, g, s, t: (g, b, t, 0, 0)
    else:
        w_index = lambda b, g, s, t: (g, b, t, 0, s)

    out_dtype = xg.dtype
    # VMEM budget: x double-buffer + w double-buffer + out double-buffer + acc.
    est = (2 * tt * Cg * ts * itemsize
           + 2 * tt * tsw * wg.dtype.itemsize
           + 2 * Cg * ts * jnp.dtype(out_dtype).itemsize
           + Cg * ts * 4)
    vmem_limit = int(min(64 << 20, max(32 << 20, 2 * est)))

    grid = (B, G, Sp // ts, T // tt)

    out = pl.pallas_call(
        functools.partial(_wsum_kernel, tt=tt),
        out_shape=jax.ShapeDtypeStruct((B, G, Cg, Sp), out_dtype),
        grid=grid,
        in_specs=[
            # x: one (Tt, Cg, TS) slab per step; Cg is the full per-group extent
            # so no (8,128) padding copy is needed.
            pl.BlockSpec((1, tt, 1, Cg, ts), lambda b, g, s, t: (b, t, g, 0, s)),
            # w: per-(b,t) scalar (TSw=1) or per-(b,t,s) row (TSw=TS); the head
            # is selected directly from the grid index -> no transpose of x.
            pl.BlockSpec((1, 1, tt, 1, tsw), w_index),
        ],
        out_specs=pl.BlockSpec((1, 1, Cg, ts), lambda b, g, s, t: (b, g, 0, s)),
        scratch_shapes=[pltpu.VMEM((Cg, ts), jnp.float32)],
        compiler_params=pltpu.CompilerParams(
            dimension_semantics=("parallel", "parallel", "parallel", "arbitrary"),
            vmem_limit_bytes=vmem_limit),
    )(xg, wg)

    if pad_s:
        out = out[..., :S]
    return out


# ---------------------------------------------------------------------------
# Attention-map resizing glue (mirrors the PyTorch branches).
# ---------------------------------------------------------------------------
def _resize_attn_group(attn, H, W):
    """att_group branch: bilinear upsample if H > w, else AvgPool2d(w // H)."""
    N, T, h, w = attn.shape
    if H > w:
        # nn.Upsample(size=(H, W), mode='bilinear', align_corners=False)
        # TODO(synk): jax.image.resize bilinear may differ from torch by a tiny
        # amount at image borders.
        return jax.image.resize(attn, (N, T, H, W), method="bilinear", antialias=False)
    k = w // H
    # nn.AvgPool2d(kernel_size=k) with stride=k (assumes h, w divisible by k).
    return attn.reshape(N, T, h // k, k, w // k, k).mean(axis=(3, 5))


def _resize_attn_mean(attn, H, W):
    """att_mean branch: always bilinear resize to (H, W)."""
    B, T, h, w = attn.shape
    return jax.image.resize(attn, (B, T, H, W), method="bilinear", antialias=False)


# ---------------------------------------------------------------------------
# Module
# ---------------------------------------------------------------------------
class TemporalAggregatorPallas:
    """Pallas-backed port of Temporal_Aggregator ('mean', 'att_mean', 'att_group')."""

    def __init__(self, mode="mean"):
        self.mode = mode

    def __call__(self, x, pad_mask=None, attn_mask=None):
        B, T, C, H, W = x.shape
        S = H * W
        # Fold the pad mask unconditionally (jit-safe; identical result to the
        # PyTorch `pad_mask.any()` branching since an all-ones mask is a no-op).
        keep = None
        if pad_mask is not None:
            keep = jnp.logical_not(pad_mask).astype(jnp.float32)  # (B, T)

        if self.mode == "att_group":
            n_heads, b2, t2, h, w = attn_mask.shape
            # TODO(synk): torch.chunk's uneven split is not reproduced.
            assert C % n_heads == 0, "att_group assumes C divisible by n_heads"
            Cg = C // n_heads
            attn = attn_mask.reshape(n_heads * b2, t2, h, w)
            attn = _resize_attn_group(attn, H, W)
            attn = attn.reshape(n_heads, B, T, 1, S)          # free reshape
            if keep is not None:
                attn = attn * keep[None, :, :, None, None]
            xg = x.reshape(B, T, n_heads, Cg, S)              # free reshape (no copy)
            out = _weighted_temporal_sum(xg, attn)            # (B, n_heads, Cg, S)
            return out.reshape(B, C, H, W)                    # head-major == torch.cat order

        if self.mode == "att_mean":
            attn = attn_mask.mean(axis=0)                     # (B, T, h, w)
            attn = _resize_attn_mean(attn, H, W)
            if keep is not None:
                attn = attn * keep[:, :, None, None]
            wg = attn.reshape(1, B, T, 1, S)                  # free reshape
            xg = x.reshape(B, T, 1, C, S)                     # free reshape
            return _weighted_temporal_sum(xg, wg).reshape(B, C, H, W)

        if self.mode == "mean":
            if keep is not None:
                # TODO(synk): a fully padded batch row divides by zero, same as torch.
                wts = keep / keep.sum(axis=1, keepdims=True)
            else:
                wts = jnp.full((B, T), 1.0 / T, dtype=jnp.float32)
            wg = wts.reshape(1, B, T, 1, 1)                   # per-(b,t) scalars, no broadcast
            xg = x.reshape(B, T, 1, C, S)
            return _weighted_temporal_sum(xg, wg).reshape(B, C, H, W)

        raise ValueError(f"unsupported mode: {self.mode}")


# ---------------------------------------------------------------------------
# Pure-JAX reference (mirrors the PyTorch forward) for correctness checks.
# ---------------------------------------------------------------------------
def _reference(x, pad_mask=None, attn_mask=None, mode="mean"):
    B, T, C, H, W = x.shape
    keep = None if pad_mask is None else jnp.logical_not(pad_mask).astype(jnp.float32)

    if mode == "att_group":
        n_heads, b2, t2, h, w = attn_mask.shape
        attn = attn_mask.reshape(n_heads * b2, t2, h, w)
        attn = _resize_attn_group(attn, H, W)
        attn = attn.reshape(n_heads, b2, t2, H, W)
        if keep is not None:
            attn = attn * keep[None, :, :, None, None]
        xg = jnp.stack(jnp.split(x, n_heads, axis=2), axis=0)   # (nh, B, T, Cg, H, W)
        out = (attn[:, :, :, None, :, :] * xg).sum(axis=2)       # (nh, B, Cg, H, W)
        return jnp.concatenate([out[g] for g in range(n_heads)], axis=1)

    if mode == "att_mean":
        attn = attn_mask.mean(axis=0)
        attn = _resize_attn_mean(attn, H, W)
        if keep is not None:
            attn = attn * keep[:, :, None, None]
        return (x * attn[:, :, None, :, :]).sum(axis=1)

    if mode == "mean":
        if keep is not None:
            out = (x * keep[:, :, None, None, None]).sum(axis=1)
            return out / keep.sum(axis=1)[:, None, None, None]
        return x.mean(axis=1)

    raise ValueError(mode)


def _check(name, got, want, rtol=1e-4, atol=1e-4):
    got = jax.block_until_ready(got)
    assert got.shape == want.shape, (name, got.shape, want.shape)
    err = float(jnp.max(jnp.abs(got.astype(jnp.float32) - want.astype(jnp.float32))))
    assert jnp.allclose(got.astype(jnp.float32), want.astype(jnp.float32),
                        rtol=rtol, atol=atol), (name, err)


if __name__ == "__main__":
    key = jax.random.PRNGKey(0)
    B, T, C, H, W = 2, 8, 4, 16, 16
    n_heads = 2

    k1, k2, k3 = jax.random.split(key, 3)
    x = jax.random.normal(k1, (B, T, C, H, W), dtype=jnp.float32)
    # pad_mask: batch 0 has its last 2 timesteps padded, batch 1 has none.
    pad_mask = jnp.arange(T)[None, :] >= jnp.array([[T - 2], [T]])
    attn_small = jax.nn.softmax(
        jax.random.normal(k2, (n_heads, B, T, 8, 8), jnp.float32), axis=2)    # h=w=8  -> upsample
    attn_big = jax.nn.softmax(
        jax.random.normal(k3, (n_heads, B, T, 32, 32), jnp.float32), axis=2)  # h=w=32 -> avg-pool

    cases = [
        ("mean/no-mask",       "mean",      None,     None),
        ("mean/mask",          "mean",      pad_mask, None),
        ("att_mean/mask",      "att_mean",  pad_mask, attn_small),
        ("att_group/upsample", "att_group", None,     attn_small),
        ("att_group/avgpool",  "att_group", pad_mask, attn_big),
    ]

    for name, mode, pm, am in cases:
        agg = TemporalAggregatorPallas(mode=mode)
        got = agg(x, pad_mask=pm, attn_mask=am)
        want = _reference(x, pad_mask=pm, attn_mask=am, mode=mode)
        _check(name, got, want)

    print("KERNEL_OK")
</pallas_src>

<mosaic_0001>
module attributes {stable_mosaic.version = 11 : i64} {
  func.func @_wsum_kernel(%arg0: i32, %arg1: i32, %arg2: i32, %arg3: i32, %arg4: memref<1x8x1x4x256xf32, #tpu.memory_space<vmem>>, %arg5: memref<1x1x8x1x1xf32, #tpu.memory_space<vmem>>, %arg6: memref<1x1x4x256xf32, #tpu.memory_space<vmem>>, %arg7: memref<4x256xf32, #tpu.memory_space<vmem>>) attributes {dimension_semantics = [#tpu.dimension_semantics<parallel>, #tpu.dimension_semantics<parallel>, #tpu.dimension_semantics<parallel>, #tpu.dimension_semantics<arbitrary>], iteration_bounds = array<i64: 2, 1, 1, 1>, scalar_prefetch = 0 : i64, scratch_operands = 1 : i64, tpu.core_type = #tpu.core_type<tc>, window_params = [{transform_indices = @transform_0, window_bounds = array<i64: 1, 8, 1, 4, 256>}, {transform_indices = @transform_1, window_bounds = array<i64: 1, 1, 8, 1, 1>}, {transform_indices = @transform_2, window_bounds = array<i64: 1, 1, 4, 256>}]} {
    %c0 = arith.constant 0 : index
    %c0_0 = arith.constant 0 : index
    %c0_1 = arith.constant 0 : index
    %c0_2 = arith.constant 0 : index
    %c0_3 = arith.constant 0 : index
    %0 = vector.load %arg4[%c0, %c0_0, %c0_1, %c0_2, %c0_3] : memref<1x8x1x4x256xf32, #tpu.memory_space<vmem>>, vector<1x1x1x4x256xf32>
    %1 = vector.shape_cast %0 : vector<1x1x1x4x256xf32> to vector<4x256xf32>
    %c0_4 = arith.constant 0 : index
    %c0_5 = arith.constant 0 : index
    %c0_6 = arith.constant 0 : index
    %c0_7 = arith.constant 0 : index
    %c0_8 = arith.constant 0 : index
    %2 = vector.load %arg5[%c0_4, %c0_5, %c0_6, %c0_7, %c0_8] : memref<1x1x8x1x1xf32, #tpu.memory_space<vmem>>, vector<1x1x1x1x1xf32>
    %3 = vector.shape_cast %2 : vector<1x1x1x1x1xf32> to vector<1x1xf32>
    %4 = vector.broadcast %3 : vector<1x1xf32> to vector<4x256xf32>
    %5 = arith.mulf %1, %4 : vector<4x256xf32>
    %c0_9 = arith.constant 0 : index
    %c1 = arith.constant 1 : index
    %c0_10 = arith.constant 0 : index
    %c0_11 = arith.constant 0 : index
    %c0_12 = arith.constant 0 : index
    %6 = vector.load %arg4[%c0_9, %c1, %c0_10, %c0_11, %c0_12] : memref<1x8x1x4x256xf32, #tpu.memory_space<vmem>>, vector<1x1x1x4x256xf32>
    %7 = vector.shape_cast %6 : vector<1x1x1x4x256xf32> to vector<4x256xf32>
    %c0_13 = arith.constant 0 : index
    %c0_14 = arith.constant 0 : index
    %c1_15 = arith.constant 1 : index
    %c0_16 = arith.constant 0 : index
    %c0_17 = arith.constant 0 : index
    %8 = vector.load %arg5[%c0_13, %c0_14, %c1_15, %c0_16, %c0_17] : memref<1x1x8x1x1xf32, #tpu.memory_space<vmem>>, vector<1x1x1x1x1xf32>
    %9 = vector.shape_cast %8 : vector<1x1x1x1x1xf32> to vector<1x1xf32>
    %10 = vector.broadcast %9 : vector<1x1xf32> to vector<4x256xf32>
    %11 = arith.mulf %7, %10 : vector<4x256xf32>
    %12 = arith.addf %5, %11 : vector<4x256xf32>
    %c0_18 = arith.constant 0 : index
    %c2 = arith.constant 2 : index
    %c0_19 = arith.constant 0 : index
    %c0_20 = arith.constant 0 : index
    %c0_21 = arith.constant 0 : index
    %13 = vector.load %arg4[%c0_18, %c2, %c0_19, %c0_20, %c0_21] : memref<1x8x1x4x256xf32, #tpu.memory_space<vmem>>, vector<1x1x1x4x256xf32>
    %14 = vector.shape_cast %13 : vector<1x1x1x4x256xf32> to vector<4x256xf32>
    %c0_22 = arith.constant 0 : index
    %c0_23 = arith.constant 0 : index
    %c2_24 = arith.constant 2 : index
    %c0_25 = arith.constant 0 : index
    %c0_26 = arith.constant 0 : index
    %15 = vector.load %arg5[%c0_22, %c0_23, %c2_24, %c0_25, %c0_26] : memref<1x1x8x1x1xf32, #tpu.memory_space<vmem>>, vector<1x1x1x1x1xf32>
    %16 = vector.shape_cast %15 : vector<1x1x1x1x1xf32> to vector<1x1xf32>
    %17 = vector.broadcast %16 : vector<1x1xf32> to vector<4x256xf32>
    %18 = arith.mulf %14, %17 : vector<4x256xf32>
    %19 = arith.addf %12, %18 : vector<4x256xf32>
    %c0_27 = arith.constant 0 : index
    %c3 = arith.constant 3 : index
    %c0_28 = arith.constant 0 : index
    %c0_29 = arith.constant 0 : index
    %c0_30 = arith.constant 0 : index
    %20 = vector.load %arg4[%c0_27, %c3, %c0_28, %c0_29, %c0_30] : memref<1x8x1x4x256xf32, #tpu.memory_space<vmem>>, vector<1x1x1x4x256xf32>
    %21 = vector.shape_cast %20 : vector<1x1x1x4x256xf32> to vector<4x256xf32>
    %c0_31 = arith.constant 0 : index
    %c0_32 = arith.constant 0 : index
    %c3_33 = arith.constant 3 : index
    %c0_34 = arith.constant 0 : index
    %c0_35 = arith.constant 0 : index
    %22 = vector.load %arg5[%c0_31, %c0_32, %c3_33, %c0_34, %c0_35] : memref<1x1x8x1x1xf32, #tpu.memory_space<vmem>>, vector<1x1x1x1x1xf32>
    %23 = vector.shape_cast %22 : vector<1x1x1x1x1xf32> to vector<1x1xf32>
    %24 = vector.broadcast %23 : vector<1x1xf32> to vector<4x256xf32>
    %25 = arith.mulf %21, %24 : vector<4x256xf32>
    %26 = arith.addf %19, %25 : vector<4x256xf32>
    %c0_36 = arith.constant 0 : index
    %c4 = arith.constant 4 : index
    %c0_37 = arith.constant 0 : index
    %c0_38 = arith.constant 0 : index
    %c0_39 = arith.constant 0 : index
    %27 = vector.load %arg4[%c0_36, %c4, %c0_37, %c0_38, %c0_39] : memref<1x8x1x4x256xf32, #tpu.memory_space<vmem>>, vector<1x1x1x4x256xf32>
    %28 = vector.shape_cast %27 : vector<1x1x1x4x256xf32> to vector<4x256xf32>
    %c0_40 = arith.constant 0 : index
    %c0_41 = arith.constant 0 : index
    %c4_42 = arith.constant 4 : index
    %c0_43 = arith.constant 0 : index
    %c0_44 = arith.constant 0 : index
    %29 = vector.load %arg5[%c0_40, %c0_41, %c4_42, %c0_43, %c0_44] : memref<1x1x8x1x1xf32, #tpu.memory_space<vmem>>, vector<1x1x1x1x1xf32>
    %30 = vector.shape_cast %29 : vector<1x1x1x1x1xf32> to vector<1x1xf32>
    %31 = vector.broadcast %30 : vector<1x1xf32> to vector<4x256xf32>
    %32 = arith.mulf %28, %31 : vector<4x256xf32>
    %33 = arith.addf %26, %32 : vector<4x256xf32>
    %c0_45 = arith.constant 0 : index
    %c5 = arith.constant 5 : index
    %c0_46 = arith.constant 0 : index
    %c0_47 = arith.constant 0 : index
    %c0_48 = arith.constant 0 : index
    %34 = vector.load %arg4[%c0_45, %c5, %c0_46, %c0_47, %c0_48] : memref<1x8x1x4x256xf32, #tpu.memory_space<vmem>>, vector<1x1x1x4x256xf32>
    %35 = vector.shape_cast %34 : vector<1x1x1x4x256xf32> to vector<4x256xf32>
    %c0_49 = arith.constant 0 : index
    %c0_50 = arith.constant 0 : index
    %c5_51 = arith.constant 5 : index
    %c0_52 = arith.constant 0 : index
    %c0_53 = arith.constant 0 : index
    %36 = vector.load %arg5[%c0_49, %c0_50, %c5_51, %c0_52, %c0_53] : memref<1x1x8x1x1xf32, #tpu.memory_space<vmem>>, vector<1x1x1x1x1xf32>
    %37 = vector.shape_cast %36 : vector<1x1x1x1x1xf32> to vector<1x1xf32>
    %38 = vector.broadcast %37 : vector<1x1xf32> to vector<4x256xf32>
    %39 = arith.mulf %35, %38 : vector<4x256xf32>
    %40 = arith.addf %33, %39 : vector<4x256xf32>
    %c0_54 = arith.constant 0 : index
    %c6 = arith.constant 6 : index
    %c0_55 = arith.constant 0 : index
    %c0_56 = arith.constant 0 : index
    %c0_57 = arith.constant 0 : index
    %41 = vector.load %arg4[%c0_54, %c6, %c0_55, %c0_56, %c0_57] : memref<1x8x1x4x256xf32, #tpu.memory_space<vmem>>, vector<1x1x1x4x256xf32>
    %42 = vector.shape_cast %41 : vector<1x1x1x4x256xf32> to vector<4x256xf32>
    %c0_58 = arith.constant 0 : index
    %c0_59 = arith.constant 0 : index
    %c6_60 = arith.constant 6 : index
    %c0_61 = arith.constant 0 : index
    %c0_62 = arith.constant 0 : index
    %43 = vector.load %arg5[%c0_58, %c0_59, %c6_60, %c0_61, %c0_62] : memref<1x1x8x1x1xf32, #tpu.memory_space<vmem>>, vector<1x1x1x1x1xf32>
    %44 = vector.shape_cast %43 : vector<1x1x1x1x1xf32> to vector<1x1xf32>
    %45 = vector.broadcast %44 : vector<1x1xf32> to vector<4x256xf32>
    %46 = arith.mulf %42, %45 : vector<4x256xf32>
    %47 = arith.addf %40, %46 : vector<4x256xf32>
    %c0_63 = arith.constant 0 : index
    %c7 = arith.constant 7 : index
    %c0_64 = arith.constant 0 : index
    %c0_65 = arith.constant 0 : index
    %c0_66 = arith.constant 0 : index
    %48 = vector.load %arg4[%c0_63, %c7, %c0_64, %c0_65, %c0_66] : memref<1x8x1x4x256xf32, #tpu.memory_space<vmem>>, vector<1x1x1x4x256xf32>
    %49 = vector.shape_cast %48 : vector<1x1x1x4x256xf32> to vector<4x256xf32>
    %c0_67 = arith.constant 0 : index
    %c0_68 = arith.constant 0 : index
    %c7_69 = arith.constant 7 : index
    %c0_70 = arith.constant 0 : index
    %c0_71 = arith.constant 0 : index
    %50 = vector.load %arg5[%c0_67, %c0_68, %c7_69, %c0_70, %c0_71] : memref<1x1x8x1x1xf32, #tpu.memory_space<vmem>>, vector<1x1x1x1x1xf32>
    %51 = vector.shape_cast %50 : vector<1x1x1x1x1xf32> to vector<1x1xf32>
    %52 = vector.broadcast %51 : vector<1x1xf32> to vector<4x256xf32>
    %53 = arith.mulf %49, %52 : vector<4x256xf32>
    %54 = arith.addf %47, %53 : vector<4x256xf32>
    %c0_i32 = arith.constant 0 : i32
    %55 = arith.cmpi eq, %arg3, %c0_i32 : i32
    %56 = arith.extui %55 : i1 to i32
    %c0_i32_72 = arith.constant 0 : i32
    %57 = arith.cmpi ne, %56, %c0_i32_72 : i32
    scf.if %57 {
      %c0_77 = arith.constant 0 : index
      %c0_78 = arith.constant 0 : index
      %64 = vector.load %arg7[%c0_77, %c0_78] : memref<4x256xf32, #tpu.memory_space<vmem>>, vector<4x256xf32>
      tpu.vector_store %arg7[%c0_77, %c0_78], %54 {strides = array<i32>} : memref<4x256xf32, #tpu.memory_space<vmem>>, vector<4x256xf32>,
    } else {
    }
    %c0_i32_73 = arith.constant 0 : i32
    %58 = arith.cmpi ne, %arg3, %c0_i32_73 : i32
    %59 = arith.extui %58 : i1 to i32
    %c0_i32_74 = arith.constant 0 : i32
    %60 = arith.cmpi ne, %59, %c0_i32_74 : i32
    scf.if %60 {
      %c0_77 = arith.constant 0 : index
      %c0_78 = arith.constant 0 : index
      %64 = vector.load %arg7[%c0_77, %c0_78] : memref<4x256xf32, #tpu.memory_space<vmem>>, vector<4x256xf32>
      %65 = arith.addf %64, %54 : vector<4x256xf32>
      %c0_79 = arith.constant 0 : index
      %c0_80 = arith.constant 0 : index
      %66 = vector.load %arg7[%c0_79, %c0_80] : memref<4x256xf32, #tpu.memory_space<vmem>>, vector<4x256xf32>
      tpu.vector_store %arg7[%c0_79, %c0_80], %65 {strides = array<i32>} : memref<4x256xf32, #tpu.memory_space<vmem>>, vector<4x256xf32>,
    } else {
    }
    %c0_i32_75 = arith.constant 0 : i32
    %61 = arith.cmpi eq, %arg3, %c0_i32_75 : i32
    %62 = arith.extui %61 : i1 to i32
    %c0_i32_76 = arith.constant 0 : i32
    %63 = arith.cmpi ne, %62, %c0_i32_76 : i32
    scf.if %63 {
      %c0_77 = arith.constant 0 : index
      %c0_78 = arith.constant 0 : index
      %64 = vector.load %arg7[%c0_77, %c0_78] : memref<4x256xf32, #tpu.memory_space<vmem>>, vector<4x256xf32>
      %c0_79 = arith.constant 0 : index
      %c0_80 = arith.constant 0 : index
      %c0_81 = arith.constant 0 : index
      %c0_82 = arith.constant 0 : index
      %65 = vector.load %arg6[%c0_79, %c0_80, %c0_81, %c0_82] : memref<1x1x4x256xf32, #tpu.memory_space<vmem>>, vector<1x1x4x256xf32>
      %66 = vector.shape_cast %65 : vector<1x1x4x256xf32> to vector<4x256xf32>
      %67 = vector.shape_cast %64 : vector<4x256xf32> to vector<1x1x4x256xf32>
      tpu.vector_store %arg6[%c0_79, %c0_80, %c0_81, %c0_82], %67 {strides = array<i32>} : memref<1x1x4x256xf32, #tpu.memory_space<vmem>>, vector<1x1x4x256xf32>,
    } else {
    }
    return
  }
  func.func @transform_0(%arg0: i32, %arg1: i32, %arg2: i32, %arg3: i32) -> (i32, i32, i32, i32, i32) {
    %c0_i32 = arith.constant 0 : i32
    %c0_i32_0 = arith.constant 0 : i32
    return %arg0, %arg3, %arg1, %c0_i32, %arg2 : i32, i32, i32, i32, i32
  }
  func.func @transform_1(%arg0: i32, %arg1: i32, %arg2: i32, %arg3: i32) -> (i32, i32, i32, i32, i32) {
    %c0_i32 = arith.constant 0 : i32
    %c0_i32_0 = arith.constant 0 : i32
    %c0_i32_1 = arith.constant 0 : i32
    return %arg1, %arg0, %arg3, %c0_i32, %c0_i32_0 : i32, i32, i32, i32, i32
  }
  func.func @transform_2(%arg0: i32, %arg1: i32, %arg2: i32, %arg3: i32) -> (i32, i32, i32, i32) {
    %c0_i32 = arith.constant 0 : i32
    %c0_i32_0 = arith.constant 0 : i32
    return %arg0, %arg1, %c0_i32, %arg2 : i32, i32, i32, i32
  }
}

</mosaic_0001>

<bundles_post_ra>
// kernel: tpu_custom_call.1
= control target key start
LH: loop header
LB: loop body
LE: loop exit
PB: predicated region body
PF: predicated region fallthrough
CT: control target
= control target key end

     0   :  { %7 = vsyncpa [#allocation4], 0  ;;  %s881_s0 = inlined_call_operand.hbm [shape: f32[2,8,1,4,256], index: 0, kind: input, shape index: {}]   ;;  %s882_s1 = inlined_call_operand.vmem [shape: f32[1,2,8,1,1], index: 1, kind: input, shape index: {}]   ;;  %s883_s2 = inlined_call_operand.hbm [shape: f32[2,1,4,256], index: 2, kind: output, shape index: {}]  }
   0x1   :  { %9 = vsyncpa [#allocation4 + $0x1], 0 }
   0x2   :  { %10 = vsyncpa [#allocation5], 0 }
   0x3   :  { %12 = vsyncpa [#allocation5 + $0x1], 0  ;;  %s745_s9 = smov 0   ;;  %s747_s10 = smov 0  }
   0x4   :  { %s749_s11 = smov 0   ;;  %s751_s12 = smov 0  }
   0x5   :  { %s753_s13 = smov 0   ;;  %s755_s14 = smov 0  }
   0x6 LB: > { %s505_s15 = sadd.s32 4294967295, %s725_s14   ;;  %s506_s16 = sadd.s32 4294967294, %s725_s14   ;;  %s725_s14 = sphi %s755_s14, %s18_s14   ;;  %s721_s13 = sphi %s753_s13, %s892_s13   ;;  %s717_s12 = sphi %s751_s12, %s891_s12   ;;  %s713_s11 = sphi %s749_s11, %s890_s11   ;;  %s709_s10 = sphi %s747_s10, %s889_s10   ;;  %s705_s9 = sphi %s745_s9, %s888_s9  }
   0x7   : > { %s44_s17 = sadd.s32 1, %s721_s13  ;;  %s57_s18 = sadd.s32 1, %s713_s11 }
   0x8   : > { %p46_p0 = scmp.ge.s32.totalorder %s44_s17, 2  ;;  %p64_p1 = scmp.ne.s32.totalorder %s713_s11, %s709_s10 }
   0x9   : > { %p65_p2 = scmp.eq.s32.totalorder %s725_s14, 0  ;;  %p70_p3 = scmp.ne.s32.totalorder %s709_s10, %s705_s9 }
   0xa   : > { %s894_s17 = smov (%p46_p0, %s44_s17), 0  ;;  %p71_p5 = scmp.eq.s32.totalorder %s505_s15, 0 }
   0xb   : > { %p786_p4 = por %p65_p2, %p64_p1  ;;  %s48_s20 = ssub.s32 %s721_s13, %s894_s17 }
   0xc   : > { %p128_p6 = scmp.eq.s32.totalorder %s505_s15, 1  ;;  %p55_p7 = scmp.eq.s32.totalorder %s48_s20, 0 }
   0xd   : > { %p792_p8 = por %p71_p5, %p70_p3  ;;  %p134_p10 = scmp.eq.s32.totalorder %s506_s16, 1 }
   0xe   : > { %p796_p9 = por %p128_p6, %p64_p1  ;;  %p508_p12 = scmp.ge.s32.totalorder %s725_s14, 2 }
   0xf   : > { %s801_s23 = scalar_select %p55_p7, %s713_s11, %s57_s18  }
  0x10   : > { %p803_p11 = por %p134_p10, %p70_p3  ;;  %p549_p13 = scmp.lt.s32.totalorder %s725_s14, 2 }
  0x11   : > { %s154_s25 = sand.u32 1, %s713_s11   ;;  %s535_s27 = sshll.u32 %s721_s13, 6 }
  0x12   : > { %s509_s26 = sshll.u32 %s154_s25, 6  ;;  %s170_s30 = scalar_lea.hbm %s881_s0, %s535_s27 }
  0x13   : > { %s158_s3 = scalar_lea.vmem [#allocation3], %s509_s26  ;;  %s171_s5 = sshll.u32 %s170_s30, 4  ;;  %s172_s5 = int_to_ptr.hbm [resolvable:$true] %s171_s5 }
  0x14   : > { %s173_s4 = sshll.u32 %s158_s3, 4  ;;  %p542_p0 = pnand %p549_p13, %p786_p4  ;;  %s174_s4 = int_to_ptr.vmem [resolvable:$true] %s173_s4 }
  0x15   : > { %p512_p1 = scmp.ge.s32.totalorder %s725_s14, 1  ;;  %s155_s6 = scalar_lea.sflag [#allocation4], %s154_s25 }
  0x16   : > { %s727_s7 = smov 128   ;;  %s728_s8 = smov 8  }
  0x17   : > { %544 = dma.hbm_to_vmem [thread:$0]  (!%p542_p0), %s172_s5, 1024, %s174_s4, %s155_s6, %s727_s7, %s727_s7, %s728_s8  }
  0x18   : > { %p197_p2 = scmp.lt.s32.totalorder %s725_s14, 3 }
  0x1a   : > { %p198_p3 = pnand %p512_p1, %p197_p2 }
  0x1b   : > { %s819_s15 = sand.u32 (!%p198_p3), 1, %s709_s10  }
  0x1c   : > { %201 = sbr.rel (%p198_p3) target bundleno = 183 (0xb7), region = 28  ;;  %s513_s16 = sshll.u32 (!%p198_p3), %s819_s15, 6 }
  0x1d   : > { %s204_s18 = scalar_lea.sflag (!%p198_p3), [#allocation4], %s819_s15  ;;  %s823_s20 = scalar_lea.vmem (!%p198_p3), [#allocation3], %s513_s16 }
  0x21   : > { %696 = dma.done.wait (%p792_p8), %s204_s18, 1024  }
  0x22   : > { %698 = vsyncadd (%p792_p8), %s204_s18, 4294966272  ;;  %p246_p4 = scmp.lt.s32.totalorder %s717_s12, 1  ;;  %v729_v0 = vmov 0   ;;  %v257_v12 = vld [vmem:[%s823_s20] sm:$0xff]  ;;  %v516_v13 = vld [vmem:[%s823_s20 + $0x8] sm:$0xff]  ;;  %s514_s21 = sshll.u32 %s819_s15, 3 }
  0x23   : > { %603 = vset.pattern.permute.xlu1 %v729_v0  ;;  %602 = vset.pattern.permute.xlu0 %v729_v0  ;;  %v518_v14 = vld [vmem:[%s823_s20 + $0x10] sm:$0xff]  ;;  %v520_v19 = vld [vmem:[%s823_s20 + $0x18] sm:$0xff]  ;;  %v522_v22 = vld [vmem:[%s823_s20 + $0x20] sm:$0xff]  ;;  %s536_s29 = sshll.u32 %s717_s12, 3  ;;  %s240_s5 = scalar_lea.vmem [#allocation6], %s514_s21 }
  0x24   : > { %s247_s19 = scalar_select %p246_p4, %s717_s12, 1  ;;  %604 = vset.pattern.permute.xlu2 %v729_v0  ;;  %v524_v25 = vld [vmem:[%s823_s20 + $0x28] sm:$0xff]  ;;  %v526_v29 = vld [vmem:[%s823_s20 + $0x30] sm:$0xff]  ;;  %v528_v33 = vld [vmem:[%s823_s20 + $0x38] sm:$0xff] }
  0x25   : > { %s383_s4 = scalar_lea.hbm %s883_s2, %s536_s29  ;;  %s385_s6 = sshll.u32 %s240_s5, 4  ;;  %s386_s6 = int_to_ptr.vmem [resolvable:$true] %s385_s6 }
  0x26   : > { %s515_s25 = sshll.u32 %s247_s19, 3  ;;  %s387_s7 = sshll.u32 %s383_s4, 4  ;;  %s388_s7 = int_to_ptr.hbm [resolvable:$true] %s387_s7 }
  0x27   : > { %s254_s28 = scalar_lea.vmem %s882_s1, %s515_s25  ;;  %s368_s12 = scalar_lea.sflag [#allocation5], %s819_s15 }
  0x28   : > { %v605_v1 = vld [vmem:[%s254_s28 + $0x2] ss:$0 sm:$0xff]  ;;  %v606_v2 = vld [vmem:[%s254_s28] ss:$0 sm:$0xff]  ;;  %v611_v3 = vld [vmem:[%s254_s28 + $0x4] ss:$0 sm:$0xff] }
  0x29   : > { %285 = vperm.xlu1 %603, %v605_v1   ;;  %262 = vperm.xlu0 %602, %v606_v2   ;;  %v607_v4 = vld [vmem:[%s254_s28 + $0x3] ss:$0 sm:$0xff]  ;;  %v608_v5 = vld [vmem:[%s254_s28 + $0x1] ss:$0 sm:$0xff]  ;;  %v612_v6 = vld [vmem:[%s254_s28 + $0x5] ss:$0 sm:$0xff] }
  0x2a   : > { %309 = vperm.xlu2 %604, %v611_v3   ;;  %v609_v7 = vld [vmem:[%s254_s28 + $0x7] ss:$0 sm:$0xff]  ;;  %v610_v8 = vld [vmem:[%s254_s28 + $0x6] ss:$0 sm:$0xff]  ;;  %s657_s8 = sshra.s32 %s388_s7, 4  ;;  %s663_s19 = scalar_lea.hbm %s883_s2, 16  ;;  %s658_s8 = int_to_ptr.hbm [resolvable:$true] %s657_s8 }
  0x2b   : > { %s659_s16 = scalar_lea.hbm %s658_s8, 8  ;;  %p664_p8 = scmp.lt.s32.totalorder %s658_s8, %s883_s2 }
  0x2c   : > { %p660_p5 = scmp.ne.s32.totalorder %s658_s8, %s659_s16  ;;  %p665_p10 = scmp.lt.s32.totalorder %s663_s19, %s659_s16 }
  0x2e   : > { %p661_p6 = pnand %p660_p5, %p796_p9  ;;  %p666_p13 = por %p665_p10, %p664_p8 }
  0x30   : > { %p662_p7 = pneg %p661_p6 }
  0x31   : > { %297 = vperm.xlu1 %603, %v607_v4   ;;  %273 = vperm.xlu0 %602, %v608_v5  }
  0x32   : > { %321 = vperm.xlu2 %604, %v612_v6   ;;  %p667_p0 = pnand %p666_p13, %p662_p7 }
  0x39   : > { %345 = vperm.xlu1 %603, %v609_v7   ;;  %333 = vperm.xlu0 %602, %v610_v8  }
  0x84   : > { %v310_v11 = vpop.permute.xlu2 %309 }
  0x85   : > { %v312_v27 = vmul.f32 %v522_v22, %v310_v11 }
  0x8c   : > { %v322_v26 = vpop.permute.xlu2 %321 }
  0x8d   : > { %v324_v31 = vmul.f32 %v524_v25, %v322_v26 }
  0x9b   : > { %v286_v9 = vpop.permute.xlu1 %285  ;;  %v263_v10 = vpop.permute.xlu0 %262 }
  0x9c   : > { %v265_v17 = vmul.f32 %v263_v10, %v257_v12  ;;  %v288_v20 = vmul.f32 %v518_v14, %v286_v9 }
  0xa3   : > { %v298_v15 = vpop.permute.xlu1 %297  ;;  %v274_v16 = vpop.permute.xlu0 %273 }
  0xa4   : > { %v276_v18 = vmul.f32 %v516_v13, %v274_v16  ;;  %v300_v23 = vmul.f32 %v520_v19, %v298_v15 }
  0xa6   : > { %v277_v21 = vadd.f32 %v276_v18, %v265_v17 }
  0xa8   : > { %v289_v24 = vadd.f32 %v288_v20, %v277_v21 }
  0xaa   : > { %v301_v28 = vadd.f32 %v300_v23, %v289_v24 }
  0xab   : > { %v334_v30 = vpop.permute.xlu0 %333  ;;  %v346_v34 = vpop.permute.xlu1 %345 }
  0xac   : > { %v313_v32 = vadd.f32 %v312_v27, %v301_v28  ;;  %v336_v36 = vmul.f32 %v526_v29, %v334_v30  ;;  %v348_v37 = vmul.f32 %v528_v33, %v346_v34 }
  0xae   : > { %v325_v35 = vadd.f32 %v324_v31, %v313_v32 }
  0xb0   : > { %v337_v38 = vadd.f32 %v336_v36, %v325_v35 }
  0xb2   : > { %v349_v39 = vadd.f32 %v348_v37, %v337_v38 }
  0xb4   : > { %366 = vst [vmem:[%s240_s5] sm:$0xff] %v349_v39 }
  0xb5   : > { %670 = shalt.err (!%p667_p0)
}
  0xb6   : > { %539 = dma.vmem_to_hbm [thread:$0]  (%p796_p9), %s386_s6, 128, %s388_s7, %s368_s12  }
  0xb7 PF: > { %s399_s15 = sand.u32 1, %s705_s9   ;;  %p546_p1 = pnand %p508_p12, %p803_p11 }
  0xb8   : > { %s400_s27 = scalar_lea.sflag [#allocation5], %s399_s15 }
  0xb9   : > { %p547_p2 = pneg %p546_p1 }
  0xbb   : > { %700 = dma.done.wait (%p547_p2), %s400_s27, 128  }
  0xbc   : > { %702 = vsyncadd (%p547_p2), %s400_s27, 4294967168  ;;  %s18_s14 = sadd.s32 1, %s725_s14   ;;  %s888_s9 = smov %s709_s10 }
  0xbd   : > { %p15_p3 = scmp.ge.s32.totalorder %s18_s14, 4   ;;  %s889_s10 = smov %s713_s11 }
  0xbe   : > { %s890_s11 = smov %s801_s23  ;;  %s891_s12 = smov %s721_s13 }
  0xbf   : > { %s892_s13 = smov %s894_s17  ;;  %17 = sbr.rel (!%p15_p3) target bundleno = 6 (0x6), region = 102 }
  0xc4   :  { %406 = vsyncpa [#allocation4], 1 }
  0xc5   :  { %408 = vsyncpa [#allocation4 + $0x1], 1 }
  0xc6   :  { %409 = vsyncpa [#allocation5], 1 }
  0xc7   :  { %411 = vsyncpa [#allocation5 + $0x1], 1 }

</bundles_post_ra>
